<compile_context>
chip_gen: v6e
topology: v6e:2x2x1
jax: 0.10.0
libtpu: 0.0.40
codegen_flags: <defaults>
</compile_context>

<pallas_src>
import jax
import jax.numpy as jnp
from jax.experimental import pallas as pl
from jax.experimental.pallas import tpu as pltpu


def conv_relu_kernel(xs_ref, w_ref, b_ref, o_ref):
    # One M-tile: [tm, K] @ [K, C_out_pad] on the MXU, f32 accumulation.
    acc = jnp.dot(xs_ref[...], w_ref[...], preferred_element_type=jnp.float32)
    o_ref[...] = jnp.maximum(acc + b_ref[...], 0.0).astype(o_ref.dtype)


def _round_up(x, m):
    return (x + m - 1) // m * m


def conv_blk_forward(x_nchw, weight, bias, pad=1, stride=1, *,
                     tm=512, compute_dtype=jnp.bfloat16):
    """ConvBlk.forward: relu(conv2d(x)).

    x_nchw: [N, C_in, H, W]        (PyTorch NCHW)
    weight: [C_out, C_in, KH, KW]  (PyTorch OIHW)
    bias:   [C_out]
    returns [N, C_out, H_out, W_out]
    """
    N, C_in, H, W = x_nchw.shape
    C_out, _, KH, KW = weight.shape
    H_out = (H + 2 * pad - KH) // stride + 1
    W_out = (W + 2 * pad - KW) // stride + 1

    M = N * H_out * W_out
    K = KH * KW * C_in

    # ---- layout plumbing (plain JAX, outside the kernel) ----
    # Folded im2col: taps concatenated along the channel/contraction axis.
    # TODO(synk): for very large, memory-bound layers, replace folded im2col
    # with halo-row DMA from the padded NHWC tensor (memory_space=pl.ANY) to
    # avoid the KH*KW x HBM read amplification inherent to im2col.
    x_nhwc = jnp.transpose(x_nchw, (0, 2, 3, 1))
    xp = jnp.pad(x_nhwc, ((0, 0), (pad, pad), (pad, pad), (0, 0)))
    taps = []
    for kh in range(KH):
        for kw in range(KW):
            taps.append(xp[:, kh:kh + stride * H_out:stride,
                           kw:kw + stride * W_out:stride, :])
    xs = jnp.concatenate(taps, axis=-1).reshape(M, K)          # [M, K]

    # weight (O, I, KH, KW) -> (KH, KW, I, O) -> [K, C_out]
    w = jnp.transpose(weight, (2, 3, 1, 0)).reshape(K, C_out)

    # ---- padding for TPU-friendly tiles ----
    C_out_pad = _round_up(C_out, 128)          # lane-dense output stores
    if M < tm:
        tm = _round_up(M, 8)                   # sublane-aligned M tile
    M_pad = _round_up(M, tm)

    xs = jnp.pad(xs, ((0, M_pad - M), (0, 0))).astype(compute_dtype)
    w = jnp.pad(w, ((0, 0), (0, C_out_pad - C_out))).astype(compute_dtype)
    b = jnp.pad(bias, (0, C_out_pad - C_out)).astype(jnp.float32)
    b = b.reshape(1, C_out_pad)

    out_dtype = x_nchw.dtype
    cd_bytes = jnp.dtype(compute_dtype).itemsize
    out_bytes = jnp.dtype(out_dtype).itemsize
    vmem_est = (2 * tm * K * cd_bytes              # xs (double-buffered)
                + 2 * K * C_out_pad * cd_bytes     # resident weights
                + 2 * C_out_pad * 4                # resident bias
                + 2 * tm * C_out_pad * out_bytes)  # output (double-buffered)
    vmem_limit = int(min(max(2 * vmem_est, 32 * 1024 * 1024),
                         48 * 1024 * 1024))        # stays safe on v7x (64 MiB)

    out = pl.pallas_call(
        conv_relu_kernel,
        out_shape=jax.ShapeDtypeStruct((M_pad, C_out_pad), out_dtype),
        grid_spec=pltpu.PrefetchScalarGridSpec(
            num_scalar_prefetch=0,
            grid=(M_pad // tm,),
            in_specs=[
                pl.BlockSpec((tm, K), lambda i: (i, 0)),
                pl.BlockSpec((K, C_out_pad), lambda i: (0, 0)),   # resident w
                pl.BlockSpec((1, C_out_pad), lambda i: (0, 0)),   # resident b
            ],
            out_specs=pl.BlockSpec((tm, C_out_pad), lambda i: (i, 0)),
        ),
        compiler_params=pltpu.CompilerParams(
            dimension_semantics=("parallel",),
            vmem_limit_bytes=vmem_limit,
        ),
    )(xs, w, b)

    out = out[:M, :C_out].reshape(N, H_out, W_out, C_out)
    return jnp.transpose(out, (0, 3, 1, 2))


if __name__ == "__main__":
    key = jax.random.PRNGKey(0)
    kx, kw, kb = jax.random.split(key, 3)

    N, C_in, H, W = 2, 4, 16, 16
    C_out, Ksz = 8, 3

    x = jax.random.normal(kx, (N, C_in, H, W), dtype=jnp.float32)

    # PyTorch Conv2d default init: U(-1/sqrt(fan_in), 1/sqrt(fan_in))
    fan_in = C_in * Ksz * Ksz
    bound = 1.0 / (fan_in ** 0.5)
    weight = jax.random.uniform(kw, (C_out, C_in, Ksz, Ksz), jnp.float32,
                                -bound, bound)
    bias = jax.random.uniform(kb, (C_out,), jnp.float32, -bound, bound)

    y = conv_blk_forward(x, weight, bias, pad=1, stride=1)
    y = jax.block_until_ready(y)

    # Reference: XLA conv + bias + ReLU in f32.
    ref = jax.lax.conv_general_dilated(
        x, weight, window_strides=(1, 1), padding=((1, 1), (1, 1)),
        dimension_numbers=("NCHW", "OIHW", "NCHW"))
    ref = jnp.maximum(ref + bias.reshape(1, C_out, 1, 1), 0.0)

    assert y.shape == (N, C_out, H, W)
    # bf16 MXU operands with f32 accumulation: compare at ~1e-2 tolerance.
    assert jnp.allclose(y, ref, atol=2e-2, rtol=2e-2), "mismatch vs reference"

    print("KERNEL_OK")
</pallas_src>

<mosaic_0001>
module attributes {stable_mosaic.version = 11 : i64} {
  func.func @conv_relu_kernel(%arg0: i32, %arg1: memref<512x36xbf16, #tpu.memory_space<vmem>>, %arg2: memref<36x128xbf16, #tpu.memory_space<vmem>>, %arg3: memref<1x128xf32, #tpu.memory_space<vmem>>, %arg4: memref<512x128xf32, #tpu.memory_space<vmem>>) attributes {dimension_semantics = [#tpu.dimension_semantics<parallel>], iteration_bounds = array<i64: 1>, scalar_prefetch = 0 : i64, scratch_operands = 0 : i64, tpu.core_type = #tpu.core_type<tc>, window_params = [{transform_indices = @transform_0, window_bounds = array<i64: 512, 36>}, {pipeline_mode = #tpu.pipeline_mode<synchronous>, transform_indices = @transform_1, window_bounds = array<i64: 36, 128>}, {pipeline_mode = #tpu.pipeline_mode<synchronous>, transform_indices = @transform_2, window_bounds = array<i64: 1, 128>}, {transform_indices = @transform_3, window_bounds = array<i64: 512, 128>}]} {
    %c0 = arith.constant 0 : index
    %c0_0 = arith.constant 0 : index
    %0 = vector.load %arg1[%c0, %c0_0] : memref<512x36xbf16, #tpu.memory_space<vmem>>, vector<512x36xbf16>
    %c0_1 = arith.constant 0 : index
    %c0_2 = arith.constant 0 : index
    %1 = vector.load %arg2[%c0_1, %c0_2] : memref<36x128xbf16, #tpu.memory_space<vmem>>, vector<36x128xbf16>
    %cst = arith.constant dense<0.000000e+00> : vector<512x128xf32>
    %2 = tpu.matmul %0, %1, %cst {dimension_numbers = #tpu.dot_dimension_numbers<[1], [0], [0], [1], [0, 0, 1, 1], [], []>} : vector<512x36xbf16>, vector<36x128xbf16>, vector<512x128xf32> -> vector<512x128xf32>
    %c0_3 = arith.constant 0 : index
    %c0_4 = arith.constant 0 : index
    %3 = vector.load %arg3[%c0_3, %c0_4] : memref<1x128xf32, #tpu.memory_space<vmem>>, vector<1x128xf32>
    %4 = vector.broadcast %3 : vector<1x128xf32> to vector<512x128xf32>
    %5 = arith.addf %2, %4 : vector<512x128xf32>
    %cst_5 = arith.constant 0.000000e+00 : f32
    %6 = vector.broadcast %cst_5 : f32 to vector<512x128xf32>
    %7 = arith.maximumf %5, %6 : vector<512x128xf32>
    %c0_6 = arith.constant 0 : index
    %c0_7 = arith.constant 0 : index
    %8 = vector.load %arg4[%c0_6, %c0_7] : memref<512x128xf32, #tpu.memory_space<vmem>>, vector<512x128xf32>
    tpu.vector_store %arg4[%c0_6, %c0_7], %7 {strides = array<i32>} : memref<512x128xf32, #tpu.memory_space<vmem>>, vector<512x128xf32>,
    return
  }
  func.func @transform_0(%arg0: i32) -> (i32, i32) {
    %c0_i32 = arith.constant 0 : i32
    %c0_i32_0 = arith.constant 0 : i32
    return %arg0, %c0_i32 : i32, i32
  }
  func.func @transform_1(%arg0: i32) -> (i32, i32) {
    %c0_i32 = arith.constant 0 : i32
    %c0_i32_0 = arith.constant 0 : i32
    %c0_i32_1 = arith.constant 0 : i32
    return %c0_i32, %c0_i32_0 : i32, i32
  }
  func.func @transform_2(%arg0: i32) -> (i32, i32) {
    %c0_i32 = arith.constant 0 : i32
    %c0_i32_0 = arith.constant 0 : i32
    %c0_i32_1 = arith.constant 0 : i32
    return %c0_i32, %c0_i32_0 : i32, i32
  }
  func.func @transform_3(%arg0: i32) -> (i32, i32) {
    %c0_i32 = arith.constant 0 : i32
    %c0_i32_0 = arith.constant 0 : i32
    return %arg0, %c0_i32 : i32, i32
  }
}

</mosaic_0001>

<bundles_post_ra>
// kernel: tpu_custom_call.1
= control target key start
LH: loop header
LB: loop body
LE: loop exit
PB: predicated region body
PF: predicated region fallthrough
CT: control target
= control target key end

     0   :  { %vm364_vm0 = vcmask 1041408   ;;  %vm267_vm1 = vcmask 293888   ;;  %s1274_s0 = inlined_call_operand.vmem [shape: bf16[512,36], index: 0, kind: input, shape index: {}]   ;;  %s1275_s1 = inlined_call_operand.vmem [shape: bf16[36,128], index: 1, kind: input, shape index: {}]   ;;  %s1276_s2 = inlined_call_operand.vmem [shape: f32[1,128], index: 2, kind: input, shape index: {}]   ;;  %s1277_s3 = inlined_call_operand.hbm [shape: f32[512,128], index: 3, kind: output, shape index: {}]  }
   0x1   :  { %v985_v0 = vld [vmem:[%s1275_s1 + $0x10] ss:$0 sps:$4 sm:$0x33]   ;;  %v986_v1 = vld [vmem:[%s1275_s1 + $0x8] sm:$0xff]   ;;  %v987_v3 = vld [vmem:[%s1275_s1] sm:$0xff]  }
   0x2   :  { %980 = vmatprep.subr.msk.bf16.mxu0 %vm364_vm0, %v985_v0  ;;  %981 = vmatprep.subr.msk.bf16.mxu1 %vm364_vm0, %v985_v0  ;;  %v366_v2 = vsel %vm364_vm0, %v985_v0, 0  ;;  %v988_v4 = vld [vmem:[%s1274_s0] sm:$0xff]   ;;  %v990_v6 = vld [vmem:[%s1274_s0 + $0x8] sm:$0xff]   ;;  %v992_v8 = vld [vmem:[%s1274_s0 + $0x10] sm:$0xff]  }
   0x3   :  { %905 = vmatpush3.bf16.msra.mxu0 %v366_v2  ;;  %977 = vmatpush3.bf16.msra.mxu1 %v366_v2  ;;  %v989_v5 = vld [vmem:[%s1274_s0 + $0x80] sm:$0xff]   ;;  %v991_v7 = vld [vmem:[%s1274_s0 + $0x88] sm:$0xff]   ;;  %v993_v9 = vld [vmem:[%s1274_s0 + $0x90] sm:$0xff]  }
   0x4   :  { %906 = vmatprep.subr.bf16.mxu0 %v986_v1  ;;  %975 = vmatprep.subr.bf16.mxu1 %v986_v1  ;;  %v994_v10 = vld [vmem:[%s1274_s0 + $0x18] sm:$0xff]   ;;  %v996_v12 = vld [vmem:[%s1274_s0 + $0x20] sm:$0xff]   ;;  %v998_v14 = vld [vmem:[%s1274_s0 + $0x28] sm:$0xff]  }
   0x5   :  { %910 = vmatprep.mubr.msk.bf16.mxu0 %vm267_vm1, %v988_v4  ;;  %942 = vmatprep.mubr.msk.bf16.mxu1 %vm267_vm1, %v989_v5  ;;  %v995_v11 = vld [vmem:[%s1274_s0 + $0x98] sm:$0xff]   ;;  %v997_v13 = vld [vmem:[%s1274_s0 + $0xa0] sm:$0xff]   ;;  %v999_v15 = vld [vmem:[%s1274_s0 + $0xa8] sm:$0xff]  }
   0x6   :  { %v1000_v16 = vld [vmem:[%s1274_s0 + $0x30] sm:$0xff]   ;;  %v1002_v18 = vld [vmem:[%s1274_s0 + $0x38] sm:$0xff]   ;;  %v1004_v20 = vld [vmem:[%s1274_s0 + $0x40] sm:$0xff]  }
   0x7   :  { %907 = vmatpush3.bf16.msra.mxu0 %v986_v1  ;;  %978 = vmatpush3.bf16.msra.mxu1 %v986_v1  ;;  %v1001_v17 = vld [vmem:[%s1274_s0 + $0xb0] sm:$0xff]   ;;  %v1003_v19 = vld [vmem:[%s1274_s0 + $0xb8] sm:$0xff]   ;;  %v1005_v21 = vld [vmem:[%s1274_s0 + $0xc0] sm:$0xff]  }
   0x8   :  { %908 = vmatprep.subr.bf16.mxu0 %v987_v3  ;;  %976 = vmatprep.subr.bf16.mxu1 %v987_v3 }
   0xb   :  { %909 = vmatpush3.bf16.msra.mxu0 %v987_v3  ;;  %979 = vmatpush3.bf16.msra.mxu1 %v987_v3 }
   0xe   :  { %911 = vmatmul.mubr.msk.bf16.vlgmr.msra.gmra.mxu0 %vm267_vm1, %v990_v6  ;;  %943 = vmatmul.mubr.msk.bf16.vlgmr.msra.gmra.mxu1 %vm267_vm1, %v991_v7 }
   0xf   :  { %914 = vmatprep.mubr.msk.bf16.mxu0 %vm267_vm1, %v992_v8  ;;  %946 = vmatprep.mubr.msk.bf16.mxu1 %vm267_vm1, %v993_v9 }
  0x16   :  { %915 = vmatmul.mubr.msk.bf16.gmra.mxu0 %vm267_vm1, %v994_v10  ;;  %947 = vmatmul.mubr.msk.bf16.gmra.mxu1 %vm267_vm1, %v995_v11 }
  0x17   :  { %918 = vmatprep.mubr.msk.bf16.mxu0 %vm267_vm1, %v996_v12  ;;  %950 = vmatprep.mubr.msk.bf16.mxu1 %vm267_vm1, %v997_v13 }
  0x1e   :  { %919 = vmatmul.mubr.msk.bf16.gmra.mxu0 %vm267_vm1, %v998_v14  ;;  %951 = vmatmul.mubr.msk.bf16.gmra.mxu1 %vm267_vm1, %v999_v15 }
  0x1f   :  { %922 = vmatprep.mubr.msk.bf16.mxu0 %vm267_vm1, %v1000_v16  ;;  %954 = vmatprep.mubr.msk.bf16.mxu1 %vm267_vm1, %v1001_v17 }
  0x20   :  { %8 = vsyncpa [#allocation3], 0  ;;  %v1006_v22 = vld [vmem:[%s1274_s0 + $0x48] sm:$0xff]   ;;  %v1008_v24 = vld [vmem:[%s1274_s0 + $0x50] sm:$0xff]  }
  0x21   :  { %v1007_v23 = vld [vmem:[%s1274_s0 + $0xc8] sm:$0xff]   ;;  %v1009_v25 = vld [vmem:[%s1274_s0 + $0xd0] sm:$0xff]   ;;  %v1010_v26 = vld [vmem:[%s1274_s0 + $0x58] sm:$0xff]  }
  0x22   :  { %v1011_v27 = vld [vmem:[%s1274_s0 + $0xd8] sm:$0xff]   ;;  %v1012_v28 = vld [vmem:[%s1274_s0 + $0x60] sm:$0xff]   ;;  %v1014_v30 = vld [vmem:[%s1274_s0 + $0x68] sm:$0xff]  }
  0x23   :  { %v1013_v29 = vld [vmem:[%s1274_s0 + $0xe0] sm:$0xff]   ;;  %v1015_v31 = vld [vmem:[%s1274_s0 + $0xe8] sm:$0xff]   ;;  %v1016_v32 = vld [vmem:[%s1274_s0 + $0x70] sm:$0xff]  }
  0x24   :  { %v1017_v33 = vld [vmem:[%s1274_s0 + $0xf0] sm:$0xff]   ;;  %v1018_v34 = vld [vmem:[%s1274_s0 + $0x78] sm:$0xff]   ;;  %v1205_v36 = vld [vmem:[%s1276_s2] ss:$0 sm:$0xff] }
  0x25   :  { %v1019_v35 = vld [vmem:[%s1274_s0 + $0xf8] sm:$0xff]   ;;  %s1042_s0 = smov [#allocation2]  }
  0x26   :  { %923 = vmatmul.mubr.msk.bf16.gmra.mxu0 %vm267_vm1, %v1002_v18  ;;  %955 = vmatmul.mubr.msk.bf16.gmra.mxu1 %vm267_vm1, %v1003_v19  ;;  %s790_s2 = sshll.u32 %s1042_s0, 4  ;;  %s791_s2 = int_to_ptr.vmem [resolvable:$true] %s790_s2 }
  0x27   :  { %926 = vmatprep.mubr.msk.bf16.mxu0 %vm267_vm1, %v1004_v20  ;;  %958 = vmatprep.mubr.msk.bf16.mxu1 %vm267_vm1, %v1005_v21  ;;  %s1020_s27 = scalar_lea.vmem %s791_s2, 8192  ;;  %p1025_p1 = scmp.lt.s32.totalorder %s791_s2, %s791_s2 }
  0x28   :  { %p1021_p0 = scmp.ne.s32.totalorder %s791_s2, %s1020_s27  ;;  %p1026_p2 = scmp.lt.s32.totalorder %s1020_s27, %s1020_s27 }
  0x2a   :  { %p1027_p3 = por %p1026_p2, %p1025_p1 }
  0x2c   :  { %p1028_p4 = pnand %p1027_p3, %p1021_p0 }
  0x2e   :  { %927 = vmatmul.mubr.msk.bf16.gmra.mxu0 %vm267_vm1, %v1006_v22  ;;  %959 = vmatmul.mubr.msk.bf16.gmra.mxu1 %vm267_vm1, %v1007_v23 }
  0x2f   :  { %930 = vmatprep.mubr.msk.bf16.mxu0 %vm267_vm1, %v1008_v24  ;;  %962 = vmatprep.mubr.msk.bf16.mxu1 %vm267_vm1, %v1009_v25 }
  0x36   :  { %931 = vmatmul.mubr.msk.bf16.gmra.mxu0 %vm267_vm1, %v1010_v26  ;;  %963 = vmatmul.mubr.msk.bf16.gmra.mxu1 %vm267_vm1, %v1011_v27 }
  0x37   :  { %934 = vmatprep.mubr.msk.bf16.mxu0 %vm267_vm1, %v1012_v28  ;;  %966 = vmatprep.mubr.msk.bf16.mxu1 %vm267_vm1, %v1013_v29 }
  0x3e   :  { %935 = vmatmul.mubr.msk.bf16.gmra.mxu0 %vm267_vm1, %v1014_v30  ;;  %967 = vmatmul.mubr.msk.bf16.gmra.mxu1 %vm267_vm1, %v1015_v31 }
  0x3f   :  { %938 = vmatprep.mubr.msk.bf16.mxu0 %vm267_vm1, %v1016_v32  ;;  %970 = vmatprep.mubr.msk.bf16.mxu1 %vm267_vm1, %v1017_v33 }
  0x46   :  { %939 = vmatmul.mubr.msk.bf16.gmra.mxu0 %vm267_vm1, %v1018_v34  ;;  %971 = vmatmul.mubr.msk.bf16.gmra.mxu1 %vm267_vm1, %v1019_v35 }
  0xce   :  { %v912_v37 = vpop.f32.mrf.mxu0  ;;  %v944_v38 = vpop.f32.mrf.mxu1 }
  0xcf   :  { %v411_v39 = vadd.f32 %v912_v37, %v1205_v36  ;;  %v539_v40 = vadd.f32 %v944_v38, %v1205_v36 }
  0xd0   :  { %v402_v41 = vpop.f32.mrf.mxu0  ;;  %v530_v42 = vpop.f32.mrf.mxu1 }
  0xd1   :  { %v659_v43 = vmax.f32 %v411_v39, 0.0  ;;  %v691_v44 = vmax.f32 %v539_v40, 0.0  ;;  %v403_v45 = vadd.f32 %v1205_v36, %v402_v41  ;;  %v531_v46 = vadd.f32 %v1205_v36, %v530_v42 }
  0xd2   :  { %v913_v47 = vpop.f32.mrf.mxu0  ;;  %v945_v48 = vpop.f32.mrf.mxu1 }
  0xd3   :  { %723 = vst [vmem:[#allocation2 + $0x10] sm:$0xff] %v659_v43  ;;  %755 = vst [vmem:[#allocation2 + $0x110] sm:$0xff] %v691_v44  ;;  %v657_v49 = vmax.f32 %v403_v45, 0.0  ;;  %v689_v50 = vmax.f32 %v531_v46, 0.0  ;;  %v414_v51 = vadd.f32 %v913_v47, %v1205_v36  ;;  %v542_v52 = vadd.f32 %v945_v48, %v1205_v36 }
  0xd4   :  { %v405_v53 = vpop.f32.mrf.mxu0  ;;  %v533_v54 = vpop.f32.mrf.mxu1 }
  0xd5   :  { %721 = vst [vmem:[#allocation2] sm:$0xff] %v657_v49  ;;  %753 = vst [vmem:[#allocation2 + $0x100] sm:$0xff] %v689_v50  ;;  %v660_v55 = vmax.f32 %v414_v51, 0.0  ;;  %v692_v56 = vmax.f32 %v542_v52, 0.0  ;;  %v406_v57 = vadd.f32 %v1205_v36, %v405_v53  ;;  %v534_v58 = vadd.f32 %v1205_v36, %v533_v54 }
  0xd6   :  { %v916_v59 = vpop.f32.mrf.mxu0  ;;  %v948_v60 = vpop.f32.mrf.mxu1 }
  0xd7   :  { %724 = vst [vmem:[#allocation2 + $0x18] sm:$0xff] %v660_v55  ;;  %756 = vst [vmem:[#allocation2 + $0x118] sm:$0xff] %v692_v56  ;;  %v658_v61 = vmax.f32 %v406_v57, 0.0  ;;  %v690_v62 = vmax.f32 %v534_v58, 0.0  ;;  %v427_v63 = vadd.f32 %v916_v59, %v1205_v36  ;;  %v555_v0 = vadd.f32 %v948_v60, %v1205_v36 }
  0xd8   :  { %v418_v1 = vpop.f32.mrf.mxu0  ;;  %v546_v2 = vpop.f32.mrf.mxu1 }
  0xd9   :  { %722 = vst [vmem:[#allocation2 + $0x8] sm:$0xff] %v658_v61  ;;  %754 = vst [vmem:[#allocation2 + $0x108] sm:$0xff] %v690_v62  ;;  %v663_v3 = vmax.f32 %v427_v63, 0.0  ;;  %v695_v4 = vmax.f32 %v555_v0, 0.0  ;;  %v419_v5 = vadd.f32 %v1205_v36, %v418_v1  ;;  %v547_v6 = vadd.f32 %v1205_v36, %v546_v2 }
  0xda   :  { %v917_v7 = vpop.f32.mrf.mxu0  ;;  %v949_v8 = vpop.f32.mrf.mxu1 }
  0xdb   :  { %727 = vst [vmem:[#allocation2 + $0x30] sm:$0xff] %v663_v3  ;;  %759 = vst [vmem:[#allocation2 + $0x130] sm:$0xff] %v695_v4  ;;  %v661_v9 = vmax.f32 %v419_v5, 0.0  ;;  %v693_v10 = vmax.f32 %v547_v6, 0.0  ;;  %v430_v11 = vadd.f32 %v917_v7, %v1205_v36  ;;  %v558_v12 = vadd.f32 %v949_v8, %v1205_v36 }
  0xdc   :  { %v421_v13 = vpop.f32.mrf.mxu0  ;;  %v549_v14 = vpop.f32.mrf.mxu1 }
  0xdd   :  { %725 = vst [vmem:[#allocation2 + $0x20] sm:$0xff] %v661_v9  ;;  %757 = vst [vmem:[#allocation2 + $0x120] sm:$0xff] %v693_v10  ;;  %v664_v15 = vmax.f32 %v430_v11, 0.0  ;;  %v696_v16 = vmax.f32 %v558_v12, 0.0  ;;  %v422_v17 = vadd.f32 %v1205_v36, %v421_v13  ;;  %v550_v18 = vadd.f32 %v1205_v36, %v549_v14 }
  0xde   :  { %v920_v19 = vpop.f32.mrf.mxu0  ;;  %v952_v20 = vpop.f32.mrf.mxu1 }
  0xdf   :  { %728 = vst [vmem:[#allocation2 + $0x38] sm:$0xff] %v664_v15  ;;  %760 = vst [vmem:[#allocation2 + $0x138] sm:$0xff] %v696_v16  ;;  %v662_v21 = vmax.f32 %v422_v17, 0.0  ;;  %v694_v22 = vmax.f32 %v550_v18, 0.0  ;;  %v443_v23 = vadd.f32 %v920_v19, %v1205_v36  ;;  %v571_v24 = vadd.f32 %v952_v20, %v1205_v36 }
  0xe0   :  { %v434_v25 = vpop.f32.mrf.mxu0  ;;  %v562_v26 = vpop.f32.mrf.mxu1 }
  0xe1   :  { %726 = vst [vmem:[#allocation2 + $0x28] sm:$0xff] %v662_v21  ;;  %758 = vst [vmem:[#allocation2 + $0x128] sm:$0xff] %v694_v22  ;;  %v667_v27 = vmax.f32 %v443_v23, 0.0  ;;  %v699_v28 = vmax.f32 %v571_v24, 0.0  ;;  %v435_v29 = vadd.f32 %v1205_v36, %v434_v25  ;;  %v563_v30 = vadd.f32 %v1205_v36, %v562_v26 }
  0xe2   :  { %v921_v31 = vpop.f32.mrf.mxu0  ;;  %v953_v32 = vpop.f32.mrf.mxu1 }
  0xe3   :  { %731 = vst [vmem:[#allocation2 + $0x50] sm:$0xff] %v667_v27  ;;  %763 = vst [vmem:[#allocation2 + $0x150] sm:$0xff] %v699_v28  ;;  %v665_v33 = vmax.f32 %v435_v29, 0.0  ;;  %v697_v34 = vmax.f32 %v563_v30, 0.0  ;;  %v446_v35 = vadd.f32 %v921_v31, %v1205_v36  ;;  %v574_v37 = vadd.f32 %v953_v32, %v1205_v36 }
  0xe4   :  { %v437_v38 = vpop.f32.mrf.mxu0  ;;  %v565_v39 = vpop.f32.mrf.mxu1 }
  0xe5   :  { %729 = vst [vmem:[#allocation2 + $0x40] sm:$0xff] %v665_v33  ;;  %761 = vst [vmem:[#allocation2 + $0x140] sm:$0xff] %v697_v34  ;;  %v668_v40 = vmax.f32 %v446_v35, 0.0  ;;  %v700_v41 = vmax.f32 %v574_v37, 0.0  ;;  %v438_v42 = vadd.f32 %v1205_v36, %v437_v38  ;;  %v566_v43 = vadd.f32 %v1205_v36, %v565_v39 }
  0xe6   :  { %v924_v44 = vpop.f32.mrf.mxu0  ;;  %v956_v45 = vpop.f32.mrf.mxu1 }
  0xe7   :  { %732 = vst [vmem:[#allocation2 + $0x58] sm:$0xff] %v668_v40  ;;  %764 = vst [vmem:[#allocation2 + $0x158] sm:$0xff] %v700_v41  ;;  %v666_v46 = vmax.f32 %v438_v42, 0.0  ;;  %v698_v47 = vmax.f32 %v566_v43, 0.0  ;;  %v459_v48 = vadd.f32 %v924_v44, %v1205_v36  ;;  %v587_v49 = vadd.f32 %v956_v45, %v1205_v36 }
  0xe8   :  { %v450_v50 = vpop.f32.mrf.mxu0  ;;  %v578_v51 = vpop.f32.mrf.mxu1 }
  0xe9   :  { %730 = vst [vmem:[#allocation2 + $0x48] sm:$0xff] %v666_v46  ;;  %762 = vst [vmem:[#allocation2 + $0x148] sm:$0xff] %v698_v47  ;;  %v671_v52 = vmax.f32 %v459_v48, 0.0  ;;  %v703_v53 = vmax.f32 %v587_v49, 0.0  ;;  %v451_v54 = vadd.f32 %v1205_v36, %v450_v50  ;;  %v579_v55 = vadd.f32 %v1205_v36, %v578_v51 }
  0xea   :  { %v925_v56 = vpop.f32.mrf.mxu0  ;;  %v957_v57 = vpop.f32.mrf.mxu1 }
  0xeb   :  { %735 = vst [vmem:[#allocation2 + $0x70] sm:$0xff] %v671_v52  ;;  %767 = vst [vmem:[#allocation2 + $0x170] sm:$0xff] %v703_v53  ;;  %v669_v58 = vmax.f32 %v451_v54, 0.0  ;;  %v701_v59 = vmax.f32 %v579_v55, 0.0  ;;  %v462_v60 = vadd.f32 %v925_v56, %v1205_v36  ;;  %v590_v61 = vadd.f32 %v957_v57, %v1205_v36 }
  0xec   :  { %v453_v62 = vpop.f32.mrf.mxu0  ;;  %v581_v63 = vpop.f32.mrf.mxu1 }
  0xed   :  { %733 = vst [vmem:[#allocation2 + $0x60] sm:$0xff] %v669_v58  ;;  %765 = vst [vmem:[#allocation2 + $0x160] sm:$0xff] %v701_v59  ;;  %v672_v0 = vmax.f32 %v462_v60, 0.0  ;;  %v704_v1 = vmax.f32 %v590_v61, 0.0  ;;  %v454_v2 = vadd.f32 %v1205_v36, %v453_v62  ;;  %v582_v3 = vadd.f32 %v1205_v36, %v581_v63 }
  0xee   :  { %v928_v4 = vpop.f32.mrf.mxu0  ;;  %v960_v5 = vpop.f32.mrf.mxu1 }
  0xef   :  { %736 = vst [vmem:[#allocation2 + $0x78] sm:$0xff] %v672_v0  ;;  %768 = vst [vmem:[#allocation2 + $0x178] sm:$0xff] %v704_v1  ;;  %v670_v6 = vmax.f32 %v454_v2, 0.0  ;;  %v702_v7 = vmax.f32 %v582_v3, 0.0  ;;  %v475_v8 = vadd.f32 %v928_v4, %v1205_v36  ;;  %v603_v9 = vadd.f32 %v960_v5, %v1205_v36 }
  0xf0   :  { %v466_v10 = vpop.f32.mrf.mxu0  ;;  %v594_v11 = vpop.f32.mrf.mxu1 }
  0xf1   :  { %734 = vst [vmem:[#allocation2 + $0x68] sm:$0xff] %v670_v6  ;;  %766 = vst [vmem:[#allocation2 + $0x168] sm:$0xff] %v702_v7  ;;  %v675_v12 = vmax.f32 %v475_v8, 0.0  ;;  %v707_v13 = vmax.f32 %v603_v9, 0.0  ;;  %v467_v14 = vadd.f32 %v1205_v36, %v466_v10  ;;  %v595_v15 = vadd.f32 %v1205_v36, %v594_v11 }
  0xf2   :  { %v929_v16 = vpop.f32.mrf.mxu0  ;;  %v961_v17 = vpop.f32.mrf.mxu1 }
  0xf3   :  { %739 = vst [vmem:[#allocation2 + $0x90] sm:$0xff] %v675_v12  ;;  %771 = vst [vmem:[#allocation2 + $0x190] sm:$0xff] %v707_v13  ;;  %v673_v18 = vmax.f32 %v467_v14, 0.0  ;;  %v705_v19 = vmax.f32 %v595_v15, 0.0  ;;  %v478_v20 = vadd.f32 %v929_v16, %v1205_v36  ;;  %v606_v21 = vadd.f32 %v961_v17, %v1205_v36 }
  0xf4   :  { %v469_v22 = vpop.f32.mrf.mxu0  ;;  %v597_v23 = vpop.f32.mrf.mxu1 }
  0xf5   :  { %737 = vst [vmem:[#allocation2 + $0x80] sm:$0xff] %v673_v18  ;;  %769 = vst [vmem:[#allocation2 + $0x180] sm:$0xff] %v705_v19  ;;  %v676_v24 = vmax.f32 %v478_v20, 0.0  ;;  %v708_v25 = vmax.f32 %v606_v21, 0.0  ;;  %v470_v26 = vadd.f32 %v1205_v36, %v469_v22  ;;  %v598_v27 = vadd.f32 %v1205_v36, %v597_v23 }
  0xf6   :  { %v932_v28 = vpop.f32.mrf.mxu0  ;;  %v964_v29 = vpop.f32.mrf.mxu1 }
  0xf7   :  { %740 = vst [vmem:[#allocation2 + $0x98] sm:$0xff] %v676_v24  ;;  %772 = vst [vmem:[#allocation2 + $0x198] sm:$0xff] %v708_v25  ;;  %v674_v30 = vmax.f32 %v470_v26, 0.0  ;;  %v706_v31 = vmax.f32 %v598_v27, 0.0  ;;  %v491_v32 = vadd.f32 %v932_v28, %v1205_v36  ;;  %v619_v33 = vadd.f32 %v964_v29, %v1205_v36 }
  0xf8   :  { %v482_v34 = vpop.f32.mrf.mxu0  ;;  %v610_v35 = vpop.f32.mrf.mxu1 }
  0xf9   :  { %738 = vst [vmem:[#allocation2 + $0x88] sm:$0xff] %v674_v30  ;;  %770 = vst [vmem:[#allocation2 + $0x188] sm:$0xff] %v706_v31  ;;  %v679_v37 = vmax.f32 %v491_v32, 0.0  ;;  %v711_v38 = vmax.f32 %v619_v33, 0.0  ;;  %v483_v39 = vadd.f32 %v1205_v36, %v482_v34  ;;  %v611_v40 = vadd.f32 %v1205_v36, %v610_v35 }
  0xfa   :  { %v933_v41 = vpop.f32.mrf.mxu0  ;;  %v965_v42 = vpop.f32.mrf.mxu1 }
  0xfb   :  { %743 = vst [vmem:[#allocation2 + $0xb0] sm:$0xff] %v679_v37  ;;  %775 = vst [vmem:[#allocation2 + $0x1b0] sm:$0xff] %v711_v38  ;;  %v677_v43 = vmax.f32 %v483_v39, 0.0  ;;  %v709_v44 = vmax.f32 %v611_v40, 0.0  ;;  %v494_v45 = vadd.f32 %v933_v41, %v1205_v36  ;;  %v622_v46 = vadd.f32 %v965_v42, %v1205_v36 }
  0xfc   :  { %v485_v47 = vpop.f32.mrf.mxu0  ;;  %v613_v48 = vpop.f32.mrf.mxu1 }
  0xfd   :  { %741 = vst [vmem:[#allocation2 + $0xa0] sm:$0xff] %v677_v43  ;;  %773 = vst [vmem:[#allocation2 + $0x1a0] sm:$0xff] %v709_v44  ;;  %v680_v49 = vmax.f32 %v494_v45, 0.0  ;;  %v712_v50 = vmax.f32 %v622_v46, 0.0  ;;  %v486_v51 = vadd.f32 %v1205_v36, %v485_v47  ;;  %v614_v52 = vadd.f32 %v1205_v36, %v613_v48 }
  0xfe   :  { %v936_v53 = vpop.f32.mrf.mxu0  ;;  %v968_v54 = vpop.f32.mrf.mxu1 }
  0xff   :  { %744 = vst [vmem:[#allocation2 + $0xb8] sm:$0xff] %v680_v49  ;;  %776 = vst [vmem:[#allocation2 + $0x1b8] sm:$0xff] %v712_v50  ;;  %v678_v55 = vmax.f32 %v486_v51, 0.0  ;;  %v710_v56 = vmax.f32 %v614_v52, 0.0  ;;  %v507_v57 = vadd.f32 %v936_v53, %v1205_v36  ;;  %v635_v58 = vadd.f32 %v968_v54, %v1205_v36 }
 0x100   :  { %v498_v59 = vpop.f32.mrf.mxu0  ;;  %v626_v60 = vpop.f32.mrf.mxu1 }
 0x101   :  { %742 = vst [vmem:[#allocation2 + $0xa8] sm:$0xff] %v678_v55  ;;  %774 = vst [vmem:[#allocation2 + $0x1a8] sm:$0xff] %v710_v56  ;;  %v683_v61 = vmax.f32 %v507_v57, 0.0  ;;  %v715_v62 = vmax.f32 %v635_v58, 0.0  ;;  %v499_v63 = vadd.f32 %v1205_v36, %v498_v59  ;;  %v627_v0 = vadd.f32 %v1205_v36, %v626_v60 }
 0x102   :  { %v937_v1 = vpop.f32.mrf.mxu0  ;;  %v969_v2 = vpop.f32.mrf.mxu1 }
 0x103   :  { %747 = vst [vmem:[#allocation2 + $0xd0] sm:$0xff] %v683_v61  ;;  %779 = vst [vmem:[#allocation2 + $0x1d0] sm:$0xff] %v715_v62  ;;  %v681_v3 = vmax.f32 %v499_v63, 0.0  ;;  %v713_v4 = vmax.f32 %v627_v0, 0.0  ;;  %v510_v5 = vadd.f32 %v937_v1, %v1205_v36  ;;  %v638_v6 = vadd.f32 %v969_v2, %v1205_v36 }
 0x104   :  { %v501_v7 = vpop.f32.mrf.mxu0  ;;  %v629_v8 = vpop.f32.mrf.mxu1 }
 0x105   :  { %745 = vst [vmem:[#allocation2 + $0xc0] sm:$0xff] %v681_v3  ;;  %777 = vst [vmem:[#allocation2 + $0x1c0] sm:$0xff] %v713_v4  ;;  %v684_v9 = vmax.f32 %v510_v5, 0.0  ;;  %v716_v10 = vmax.f32 %v638_v6, 0.0  ;;  %v502_v11 = vadd.f32 %v1205_v36, %v501_v7  ;;  %v630_v12 = vadd.f32 %v1205_v36, %v629_v8 }
 0x106   :  { %v940_v13 = vpop.f32.mrf.mxu0  ;;  %v972_v14 = vpop.f32.mrf.mxu1 }
 0x107   :  { %748 = vst [vmem:[#allocation2 + $0xd8] sm:$0xff] %v684_v9  ;;  %780 = vst [vmem:[#allocation2 + $0x1d8] sm:$0xff] %v716_v10  ;;  %v682_v15 = vmax.f32 %v502_v11, 0.0  ;;  %v714_v16 = vmax.f32 %v630_v12, 0.0  ;;  %v523_v17 = vadd.f32 %v940_v13, %v1205_v36  ;;  %v651_v18 = vadd.f32 %v972_v14, %v1205_v36 }
 0x108   :  { %v514_v19 = vpop.f32.mrf.mxu0  ;;  %v642_v20 = vpop.f32.mrf.mxu1 }
 0x109   :  { %746 = vst [vmem:[#allocation2 + $0xc8] sm:$0xff] %v682_v15  ;;  %778 = vst [vmem:[#allocation2 + $0x1c8] sm:$0xff] %v714_v16  ;;  %v687_v21 = vmax.f32 %v523_v17, 0.0  ;;  %v719_v22 = vmax.f32 %v651_v18, 0.0  ;;  %v515_v23 = vadd.f32 %v1205_v36, %v514_v19  ;;  %v643_v24 = vadd.f32 %v1205_v36, %v642_v20 }
 0x10a   :  { %v941_v25 = vpop.f32.mrf.mxu0  ;;  %v973_v26 = vpop.f32.mrf.mxu1 }
 0x10b   :  { %751 = vst [vmem:[#allocation2 + $0xf0] sm:$0xff] %v687_v21  ;;  %783 = vst [vmem:[#allocation2 + $0x1f0] sm:$0xff] %v719_v22  ;;  %v685_v27 = vmax.f32 %v515_v23, 0.0  ;;  %v717_v28 = vmax.f32 %v643_v24, 0.0  ;;  %v526_v29 = vadd.f32 %v941_v25, %v1205_v36  ;;  %v654_v30 = vadd.f32 %v973_v26, %v1205_v36 }
 0x10c   :  { %v517_v31 = vpop.f32.mrf.mxu0  ;;  %v645_v32 = vpop.f32.mrf.mxu1 }
 0x10d   :  { %749 = vst [vmem:[#allocation2 + $0xe0] sm:$0xff] %v685_v27  ;;  %781 = vst [vmem:[#allocation2 + $0x1e0] sm:$0xff] %v717_v28  ;;  %v688_v33 = vmax.f32 %v526_v29, 0.0  ;;  %v720_v34 = vmax.f32 %v654_v30, 0.0  ;;  %v518_v35 = vadd.f32 %v1205_v36, %v517_v31  ;;  %v646_v37 = vadd.f32 %v1205_v36, %v645_v32 }
 0x10f   :  { %752 = vst [vmem:[#allocation2 + $0xf8] sm:$0xff] %v688_v33  ;;  %784 = vst [vmem:[#allocation2 + $0x1f8] sm:$0xff] %v720_v34  ;;  %v686_v38 = vmax.f32 %v518_v35, 0.0  ;;  %v718_v39 = vmax.f32 %v646_v37, 0.0 }
 0x111   :  { %750 = vst [vmem:[#allocation2 + $0xe8] sm:$0xff] %v686_v38  ;;  %782 = vst [vmem:[#allocation2 + $0x1e8] sm:$0xff] %v718_v39 }
 0x112   :  { %1031 = shalt.err (!%p1028_p4)
}
 0x113   :  { %s1043_s28 = smov 128   ;;  %s1044_s29 = smov 8  }
 0x114   :  { %796 = dma.vmem_to_hbm [thread:$0]  %s791_s2, 8192, %s1277_s3, [#allocation3], %s1043_s28, %s1043_s28, %s1044_s29  }
 0x115   :  { %1040 = dma.done.wait [#allocation3], 8192  }
 0x116   :  { %1041 = vsyncadd [#allocation3], 4294959104 }
 0x117   :  { %800 = vsyncpa [#allocation3], 1 }

</bundles_post_ra>
